<compile_context>
chip_gen: v6e
topology: v6e:2x2x1
jax: 0.10.0
libtpu: 0.0.40
codegen_flags: <defaults>
</compile_context>

<pallas_src>
import jax
import jax.numpy as jnp
from jax.experimental import pallas as pl
from jax.experimental.pallas import tpu as pltpu


def fused_kernel(hidden_ref, wds_ref, bds_ref, raw_ref, wda_ref, bda_ref,
                 wg_ref, bg_ref, wup_ref, bup_ref,
                 o_ref,
                 af_sc, m_sc, d_sc, acc_sc):
    """One transformer layer per grid step; online-softmax gated combine."""
    l = pl.program_id(0)
    B, S, H = hidden_ref.shape
    _, Sa, E = raw_ref.shape
    M = wds_ref.shape[1]

    # ---- prologue: anchor downsample + accumulator init (once, l == 0) -----
    @pl.when(l == 0)
    def _init():
        x = jnp.maximum(raw_ref[...], 0)                       # ReLU (native dtype)
        af = jnp.dot(x.reshape(B * Sa, E), wda_ref[...],
                     preferred_element_type=jnp.float32)
        af_sc[...] = af.reshape(B, Sa, M) + bda_ref[...].astype(jnp.float32)
        m_sc[...] = jnp.full_like(m_sc, -jnp.inf)
        d_sc[...] = jnp.zeros_like(d_sc)
        acc_sc[...] = jnp.zeros_like(acc_sc)

    # ---- downsample_layers[l]: ReLU -> Linear -------------------------------
    x = jnp.maximum(hidden_ref[...], 0)                        # (B,S,H)
    tf = jnp.dot(x.reshape(B * S, H), wds_ref[...],
                 preferred_element_type=jnp.float32)
    tf = tf.reshape(B, S, M) + bds_ref[...].astype(jnp.float32)  # (B,S,M)

    # _aggregate_feature with mask=None -> mean over seq
    target = jnp.mean(tf, axis=1)                              # (B,M)

    # ---- _cross_attention(anchor_features, target_features) -----------------
    af = af_sc[...]                                            # (B,Sa,M) f32
    cw = jnp.einsum('bqm,bkm->bqk', af, tf,
                    preferred_element_type=jnp.float32)        # (B,Sa,S)
    cw = jnp.maximum(cw, 0.0)                                  # relu
    norm = jnp.maximum(jnp.sum(cw, axis=-1, keepdims=True), 1e-6)
    cw = cw * pl.reciprocal(norm, approx=True)                 # l1norm (EUP recip)
    wcontext = jnp.einsum('bqk,bkm->bqm', cw, tf,
                          preferred_element_type=jnp.float32)  # (B,Sa,M)

    # + target_features[:, 0, :] (position=None branch)
    merged = wcontext + tf[:, 0:1, :]                          # (B,Sa,M)

    # ---- gate logit: VPU reduction instead of an N=1 MXU matmul -------------
    anchor = af[:, 0, :]                                       # (B,M)
    gate_in = anchor * target                                  # (B,M)
    logit = jnp.sum(gate_in * wg_ref[...].astype(jnp.float32),
                    axis=-1, keepdims=True)                    # (B,1)
    logit = logit + bg_ref[...].astype(jnp.float32)            # (B,1)

    # ---- online softmax over the layer axis ----------------------------------
    m_prev = m_sc[...]                                         # (B,1)
    m_new = jnp.maximum(m_prev, logit)
    alpha = jnp.exp(m_prev - m_new)                            # 0 at l==0
    p = jnp.exp(logit - m_new)
    d_sc[...] = alpha * d_sc[...] + p
    acc_sc[...] = alpha[:, :, None] * acc_sc[...] + p[:, :, None] * merged
    m_sc[...] = m_new

    # ---- epilogue: normalize, upsample, residual (once, l == L-1) -----------
    @pl.when(l == pl.num_programs(0) - 1)
    def _finish():
        inv_d = pl.reciprocal(d_sc[...], approx=True)          # (B,1)
        mf = acc_sc[...] * inv_d[:, :, None]                   # (B,Sa,M)
        up = jnp.dot(jnp.maximum(mf, 0.0).reshape(B * Sa, M), wup_ref[...],
                     preferred_element_type=jnp.float32)
        up = up.reshape(B, Sa, E) + bup_ref[...].astype(jnp.float32)
        o_ref[...] = (raw_ref[...].astype(jnp.float32) + up).astype(o_ref.dtype)


# ----------------------------------------------------------------------------
# Wrapper
# ----------------------------------------------------------------------------
def our_tuning_forward(all_hidden, raw_anchor, Wds, bds, Wd_a, bd_a,
                       Wup, bup, Wg, bg):
    L, B, S, H = all_hidden.shape
    _, Sa, E = raw_anchor.shape
    M = Wd_a.shape[1]

    wg_vec = Wg.reshape(1, M)          # (M,1) -> (1,M) row vector for VPU reduce
    bg_mat = bg.reshape(1, 1)

    out = pl.pallas_call(
        fused_kernel,
        grid=(L,),
        in_specs=[
            pl.BlockSpec((None, B, S, H), lambda l: (l, 0, 0, 0)),  # all_hidden
            pl.BlockSpec((None, H, M), lambda l: (l, 0, 0)),        # Wds[l]
            pl.BlockSpec((None, 1, M), lambda l: (l, 0, 0)),        # bds[l]
            pl.BlockSpec((B, Sa, E), lambda l: (0, 0, 0)),          # raw_anchor (resident)
            pl.BlockSpec((E, M), lambda l: (0, 0)),                 # Wd_a
            pl.BlockSpec((1, M), lambda l: (0, 0)),                 # bd_a
            pl.BlockSpec((1, M), lambda l: (0, 0)),                 # Wg (as row vec)
            pl.BlockSpec((1, 1), lambda l: (0, 0)),                 # bg
            pl.BlockSpec((M, E), lambda l: (0, 0)),                 # Wup
            pl.BlockSpec((1, E), lambda l: (0, 0)),                 # bup
        ],
        out_specs=pl.BlockSpec((B, Sa, E), lambda l: (0, 0, 0)),
        out_shape=jax.ShapeDtypeStruct((B, Sa, E), jnp.float32),
        scratch_shapes=[
            pltpu.VMEM((B, Sa, M), jnp.float32),   # cached anchor_features
            pltpu.VMEM((B, 1), jnp.float32),       # running max of logits
            pltpu.VMEM((B, 1), jnp.float32),       # running softmax denom
            pltpu.VMEM((B, Sa, M), jnp.float32),   # weighted-merged accumulator
        ],
        compiler_params=pltpu.CompilerParams(
            # sequential accumulation over layers -> arbitrary
            dimension_semantics=("arbitrary",)),
    )(all_hidden, Wds, bds, raw_anchor, Wd_a, bd_a, wg_vec, bg_mat, Wup, bup)
    # `.squeeze(1)` in the torch module is a no-op when Sa != 1
    return out


# ----------------------------------------------------------------------------
# Pure-JAX reference (mirrors the PyTorch forward, mask=None / position=None)
# ----------------------------------------------------------------------------
def reference_forward(all_hidden, raw_anchor, Wds, bds, Wd_a, bd_a,
                      Wup, bup, Wg, bg):
    def relu_linear(x, w, b):
        return jnp.maximum(x, 0.0) @ w + b

    L = all_hidden.shape[0]
    af = relu_linear(raw_anchor, Wd_a, bd_a[0])
    anchor = af[:, 0, :]
    conf, merged_set = [], []
    for i in range(L):
        tf = relu_linear(all_hidden[i], Wds[i], bds[i, 0])
        target = tf.mean(axis=1)
        cw = jnp.einsum('bqm,bkm->bqk', af, tf)
        cw = jnp.maximum(cw, 0.0)
        cw = cw / jnp.maximum(jnp.sum(jnp.abs(cw), -1, keepdims=True), 1e-6)
        wcontext = jnp.einsum('bqk,bkm->bqm', cw, tf)
        merged_set.append(wcontext + tf[:, 0:1, :])
        conf.append((anchor * target) @ Wg + bg[0])
    conf_norm = jax.nn.softmax(jnp.concatenate(conf, axis=1), axis=1)   # (B,L)
    all_merged = jnp.stack(merged_set, axis=1)                          # (B,L,Sa,M)
    mf = jnp.sum(all_merged * conf_norm[:, :, None, None], axis=1)
    return raw_anchor + relu_linear(mf, Wup, bup[0])


if __name__ == "__main__":
    # small shapes: num_layer=4, hidden_size=[32]*4, embed_size=32,
    # downsample_D_factor=2 -> mapping_size=16; batch=2, seq=8, anchor_seq=4
    L, B, S, Sa = 4, 2, 8, 4
    H, E, M = 32, 32, 16

    key = jax.random.PRNGKey(0)
    ks = jax.random.split(key, 10)
    all_hidden = jax.random.normal(ks[0], (L, B, S, H), jnp.float32)
    raw_anchor = jax.random.normal(ks[1], (B, Sa, E), jnp.float32)

    # deterministic synthetic parameters (Linear stored as (in, out))
    Wds = 0.1 * jax.random.normal(ks[2], (L, H, M), jnp.float32)
    bds = 0.1 * jax.random.normal(ks[3], (L, 1, M), jnp.float32)
    Wd_a = 0.1 * jax.random.normal(ks[4], (E, M), jnp.float32)
    bd_a = 0.1 * jax.random.normal(ks[5], (1, M), jnp.float32)
    Wup = 0.1 * jax.random.normal(ks[6], (M, E), jnp.float32)
    bup = 0.1 * jax.random.normal(ks[7], (1, E), jnp.float32)
    Wg = 0.1 * jax.random.normal(ks[8], (M, 1), jnp.float32)
    bg = 0.1 * jax.random.normal(ks[9], (1, 1), jnp.float32)

    out = our_tuning_forward(all_hidden, raw_anchor, Wds, bds, Wd_a, bd_a,
                             Wup, bup, Wg, bg)
    out = jax.block_until_ready(out)

    ref = reference_forward(all_hidden, raw_anchor, Wds, bds, Wd_a, bd_a,
                            Wup, bup, Wg, bg)
    assert out.shape == (B, Sa, E)
    # tolerance covers the approx (EUP) reciprocals used for l1norm / softmax
    assert jnp.allclose(out, ref, rtol=1e-2, atol=1e-2), "mismatch vs reference"
    print("KERNEL_OK")
</pallas_src>

<mosaic_0001>
module attributes {stable_mosaic.version = 11 : i64} {
  func.func @fused_kernel(%arg0: i32, %arg1: memref<1x2x8x32xf32, #tpu.memory_space<vmem>>, %arg2: memref<1x32x16xf32, #tpu.memory_space<vmem>>, %arg3: memref<1x1x16xf32, #tpu.memory_space<vmem>>, %arg4: memref<2x4x32xf32, #tpu.memory_space<vmem>>, %arg5: memref<32x16xf32, #tpu.memory_space<vmem>>, %arg6: memref<1x16xf32, #tpu.memory_space<vmem>>, %arg7: memref<1x16xf32, #tpu.memory_space<vmem>>, %arg8: memref<1x1xf32, #tpu.memory_space<vmem>>, %arg9: memref<16x32xf32, #tpu.memory_space<vmem>>, %arg10: memref<1x32xf32, #tpu.memory_space<vmem>>, %arg11: memref<2x4x32xf32, #tpu.memory_space<vmem>>, %arg12: memref<2x4x16xf32, #tpu.memory_space<vmem>>, %arg13: memref<2x1xf32, #tpu.memory_space<vmem>>, %arg14: memref<2x1xf32, #tpu.memory_space<vmem>>, %arg15: memref<2x4x16xf32, #tpu.memory_space<vmem>>) attributes {dimension_semantics = [#tpu.dimension_semantics<arbitrary>], iteration_bounds = array<i64: 4>, scalar_prefetch = 0 : i64, scratch_operands = 4 : i64, tpu.core_type = #tpu.core_type<tc>, window_params = [{transform_indices = @transform_0, window_bounds = array<i64: 1, 2, 8, 32>}, {transform_indices = @transform_1, window_bounds = array<i64: 1, 32, 16>}, {transform_indices = @transform_2, window_bounds = array<i64: 1, 1, 16>}, {pipeline_mode = #tpu.pipeline_mode<synchronous>, transform_indices = @transform_3, window_bounds = array<i64: 2, 4, 32>}, {pipeline_mode = #tpu.pipeline_mode<synchronous>, transform_indices = @transform_4, window_bounds = array<i64: 32, 16>}, {pipeline_mode = #tpu.pipeline_mode<synchronous>, transform_indices = @transform_5, window_bounds = array<i64: 1, 16>}, {pipeline_mode = #tpu.pipeline_mode<synchronous>, transform_indices = @transform_6, window_bounds = array<i64: 1, 16>}, {pipeline_mode = #tpu.pipeline_mode<synchronous>, transform_indices = @transform_7, window_bounds = array<i64: 1, 1>}, {pipeline_mode = #tpu.pipeline_mode<synchronous>, transform_indices = @transform_8, window_bounds = array<i64: 16, 32>}, {pipeline_mode = #tpu.pipeline_mode<synchronous>, transform_indices = @transform_9, window_bounds = array<i64: 1, 32>}, {pipeline_mode = #tpu.pipeline_mode<synchronous>, transform_indices = @transform_10, window_bounds = array<i64: 2, 4, 32>}]} {
    %c0_i32 = arith.constant 0 : i32
    %0 = arith.cmpi eq, %arg0, %c0_i32 : i32
    %1 = arith.extui %0 : i1 to i32
    %c0_i32_0 = arith.constant 0 : i32
    %2 = arith.cmpi ne, %1, %c0_i32_0 : i32
    scf.if %2 {
      %c0_41 = arith.constant 0 : index
      %c0_42 = arith.constant 0 : index
      %c0_43 = arith.constant 0 : index
      %69 = vector.load %arg4[%c0_41, %c0_42, %c0_43] : memref<2x4x32xf32, #tpu.memory_space<vmem>>, vector<2x4x32xf32>
      %cst_44 = arith.constant 0.000000e+00 : f32
      %70 = vector.broadcast %cst_44 : f32 to vector<2x4x32xf32>
      %71 = arith.maximumf %69, %70 : vector<2x4x32xf32>
      %72 = vector.shape_cast %71 : vector<2x4x32xf32> to vector<8x32xf32>
      %c0_45 = arith.constant 0 : index
      %c0_46 = arith.constant 0 : index
      %73 = vector.load %arg5[%c0_45, %c0_46] : memref<32x16xf32, #tpu.memory_space<vmem>>, vector<32x16xf32>
      %cst_47 = arith.constant dense<0.000000e+00> : vector<8x16xf32>
      %74 = tpu.matmul %72, %73, %cst_47 {dimension_numbers = #tpu.dot_dimension_numbers<[1], [0], [0], [1], [0, 0, 1, 1], [], []>} : vector<8x32xf32>, vector<32x16xf32>, vector<8x16xf32> -> vector<8x16xf32>
      %75 = vector.shape_cast %74 : vector<8x16xf32> to vector<2x4x16xf32>
      %c0_48 = arith.constant 0 : index
      %c0_49 = arith.constant 0 : index
      %76 = vector.load %arg6[%c0_48, %c0_49] : memref<1x16xf32, #tpu.memory_space<vmem>>, vector<1x16xf32>
      %77 = vector.shape_cast %76 : vector<1x16xf32> to vector<1x1x16xf32>
      %78 = vector.broadcast %77 : vector<1x1x16xf32> to vector<2x4x16xf32>
      %79 = arith.addf %75, %78 : vector<2x4x16xf32>
      %c0_50 = arith.constant 0 : index
      %c0_51 = arith.constant 0 : index
      %c0_52 = arith.constant 0 : index
      %80 = vector.load %arg12[%c0_50, %c0_51, %c0_52] : memref<2x4x16xf32, #tpu.memory_space<vmem>>, vector<2x4x16xf32>
      tpu.vector_store %arg12[%c0_50, %c0_51, %c0_52], %79 {strides = array<i32>} : memref<2x4x16xf32, #tpu.memory_space<vmem>>, vector<2x4x16xf32>,
      %cst_53 = arith.constant 0xFF800000 : f32
      %81 = vector.broadcast %cst_53 : f32 to vector<2x1xf32>
      %c0_54 = arith.constant 0 : index
      %c0_55 = arith.constant 0 : index
      %82 = vector.load %arg13[%c0_54, %c0_55] : memref<2x1xf32, #tpu.memory_space<vmem>>, vector<2x1xf32>
      tpu.vector_store %arg13[%c0_54, %c0_55], %81 {strides = array<i32>} : memref<2x1xf32, #tpu.memory_space<vmem>>, vector<2x1xf32>,
      %cst_56 = arith.constant 0.000000e+00 : f32
      %83 = vector.broadcast %cst_56 : f32 to vector<2x1xf32>
      %c0_57 = arith.constant 0 : index
      %c0_58 = arith.constant 0 : index
      %84 = vector.load %arg14[%c0_57, %c0_58] : memref<2x1xf32, #tpu.memory_space<vmem>>, vector<2x1xf32>
      tpu.vector_store %arg14[%c0_57, %c0_58], %83 {strides = array<i32>} : memref<2x1xf32, #tpu.memory_space<vmem>>, vector<2x1xf32>,
      %cst_59 = arith.constant 0.000000e+00 : f32
      %85 = vector.broadcast %cst_59 : f32 to vector<2x4x16xf32>
      %c0_60 = arith.constant 0 : index
      %c0_61 = arith.constant 0 : index
      %c0_62 = arith.constant 0 : index
      %86 = vector.load %arg15[%c0_60, %c0_61, %c0_62] : memref<2x4x16xf32, #tpu.memory_space<vmem>>, vector<2x4x16xf32>
      tpu.vector_store %arg15[%c0_60, %c0_61, %c0_62], %85 {strides = array<i32>} : memref<2x4x16xf32, #tpu.memory_space<vmem>>, vector<2x4x16xf32>,
    } else {
    }
    %c0 = arith.constant 0 : index
    %c0_1 = arith.constant 0 : index
    %c0_2 = arith.constant 0 : index
    %c0_3 = arith.constant 0 : index
    %3 = vector.load %arg1[%c0, %c0_1, %c0_2, %c0_3] : memref<1x2x8x32xf32, #tpu.memory_space<vmem>>, vector<1x2x8x32xf32>
    %4 = vector.shape_cast %3 : vector<1x2x8x32xf32> to vector<2x8x32xf32>
    %cst = arith.constant 0.000000e+00 : f32
    %5 = vector.broadcast %cst : f32 to vector<2x8x32xf32>
    %6 = arith.maximumf %4, %5 : vector<2x8x32xf32>
    %7 = vector.shape_cast %6 : vector<2x8x32xf32> to vector<16x32xf32>
    %c0_4 = arith.constant 0 : index
    %c0_5 = arith.constant 0 : index
    %c0_6 = arith.constant 0 : index
    %8 = vector.load %arg2[%c0_4, %c0_5, %c0_6] : memref<1x32x16xf32, #tpu.memory_space<vmem>>, vector<1x32x16xf32>
    %9 = vector.shape_cast %8 : vector<1x32x16xf32> to vector<32x16xf32>
    %cst_7 = arith.constant dense<0.000000e+00> : vector<16x16xf32>
    %10 = tpu.matmul %7, %9, %cst_7 {dimension_numbers = #tpu.dot_dimension_numbers<[1], [0], [0], [1], [0, 0, 1, 1], [], []>} : vector<16x32xf32>, vector<32x16xf32>, vector<16x16xf32> -> vector<16x16xf32>
    %11 = vector.shape_cast %10 : vector<16x16xf32> to vector<2x8x16xf32>
    %c0_8 = arith.constant 0 : index
    %c0_9 = arith.constant 0 : index
    %c0_10 = arith.constant 0 : index
    %12 = vector.load %arg3[%c0_8, %c0_9, %c0_10] : memref<1x1x16xf32, #tpu.memory_space<vmem>>, vector<1x1x16xf32>
    %13 = vector.shape_cast %12 : vector<1x1x16xf32> to vector<1x16xf32>
    %14 = vector.shape_cast %13 : vector<1x16xf32> to vector<1x1x16xf32>
    %15 = vector.broadcast %14 : vector<1x1x16xf32> to vector<2x8x16xf32>
    %16 = arith.addf %11, %15 : vector<2x8x16xf32>
    %cst_11 = arith.constant dense<0.000000e+00> : vector<2x16xf32>
    %17 = vector.multi_reduction <add>, %16, %cst_11 [1] : vector<2x8x16xf32> to vector<2x16xf32>
    %cst_12 = arith.constant 8.000000e+00 : f32
    %18 = vector.broadcast %cst_12 : f32 to vector<2x16xf32>
    %19 = arith.divf %17, %18 : vector<2x16xf32>
    %c0_13 = arith.constant 0 : index
    %c0_14 = arith.constant 0 : index
    %c0_15 = arith.constant 0 : index
    %20 = vector.load %arg12[%c0_13, %c0_14, %c0_15] : memref<2x4x16xf32, #tpu.memory_space<vmem>>, vector<2x4x16xf32>
    "tpu.trace_start"() <{level = 10 : i32, message = "bqm,bkm->bqk"}> : () -> ()
    %cst_16 = arith.constant dense<0.000000e+00> : vector<2x4x8xf32>
    %21 = tpu.matmul %20, %16, %cst_16 {dimension_numbers = #tpu.dot_dimension_numbers<[2], [2], [1], [1], [0, 0, 0, 1, 1, 1], [0], [0]>} : vector<2x4x16xf32>, vector<2x8x16xf32>, vector<2x4x8xf32> -> vector<2x4x8xf32>
    "tpu.trace_stop"() : () -> ()
    %cst_17 = arith.constant 0.000000e+00 : f32
    %22 = vector.broadcast %cst_17 : f32 to vector<2x4x8xf32>
    %23 = arith.maximumf %21, %22 : vector<2x4x8xf32>
    %cst_18 = arith.constant dense<0.000000e+00> : vector<2x4xf32>
    %24 = vector.multi_reduction <add>, %23, %cst_18 [2] : vector<2x4x8xf32> to vector<2x4xf32>
    %25 = vector.shape_cast %24 : vector<2x4xf32> to vector<2x4x1xf32>
    %cst_19 = arith.constant 9.99999997E-7 : f32
    %26 = vector.broadcast %cst_19 : f32 to vector<2x4x1xf32>
    %27 = arith.maximumf %25, %26 : vector<2x4x1xf32>
    %28 = tpu.reciprocal %27 {approx = true} : vector<2x4x1xf32> -> vector<2x4x1xf32>
    %29 = vector.broadcast %28 : vector<2x4x1xf32> to vector<2x4x8xf32>
    %30 = arith.mulf %23, %29 : vector<2x4x8xf32>
    "tpu.trace_start"() <{level = 10 : i32, message = "bqk,bkm->bqm"}> : () -> ()
    %cst_20 = arith.constant dense<0.000000e+00> : vector<2x4x16xf32>
    %31 = tpu.matmul %30, %16, %cst_20 {dimension_numbers = #tpu.dot_dimension_numbers<[2], [1], [1], [2], [0, 0, 0, 1, 1, 2], [0], [0]>} : vector<2x4x8xf32>, vector<2x8x16xf32>, vector<2x4x16xf32> -> vector<2x4x16xf32>
    "tpu.trace_stop"() : () -> ()
    %32 = vector.extract_strided_slice %16 {offsets = [0, 0, 0], sizes = [2, 1, 16], strides = [1, 1, 1]} : vector<2x8x16xf32> to vector<2x1x16xf32>
    %33 = vector.broadcast %32 : vector<2x1x16xf32> to vector<2x4x16xf32>
    %34 = arith.addf %31, %33 : vector<2x4x16xf32>
    %35 = vector.extract_strided_slice %20 {offsets = [0, 0, 0], sizes = [2, 1, 16], strides = [1, 1, 1]} : vector<2x4x16xf32> to vector<2x1x16xf32>
    %36 = vector.shape_cast %35 : vector<2x1x16xf32> to vector<2x16xf32>
    %37 = arith.mulf %36, %19 : vector<2x16xf32>
    %c0_21 = arith.constant 0 : index
    %c0_22 = arith.constant 0 : index
    %38 = vector.load %arg7[%c0_21, %c0_22] : memref<1x16xf32, #tpu.memory_space<vmem>>, vector<1x16xf32>
    %39 = vector.broadcast %38 : vector<1x16xf32> to vector<2x16xf32>
    %40 = arith.mulf %37, %39 : vector<2x16xf32>
    %cst_23 = arith.constant dense<0.000000e+00> : vector<2xf32>
    %41 = vector.multi_reduction <add>, %40, %cst_23 [1] : vector<2x16xf32> to vector<2xf32>
    %42 = vector.shape_cast %41 : vector<2xf32> to vector<2x1xf32>
    %c0_24 = arith.constant 0 : index
    %c0_25 = arith.constant 0 : index
    %43 = vector.load %arg8[%c0_24, %c0_25] : memref<1x1xf32, #tpu.memory_space<vmem>>, vector<1x1xf32>
    %44 = vector.broadcast %43 : vector<1x1xf32> to vector<2x1xf32>
    %45 = arith.addf %42, %44 : vector<2x1xf32>
    %c0_26 = arith.constant 0 : index
    %c0_27 = arith.constant 0 : index
    %46 = vector.load %arg13[%c0_26, %c0_27] : memref<2x1xf32, #tpu.memory_space<vmem>>, vector<2x1xf32>
    %47 = arith.maximumf %46, %45 : vector<2x1xf32>
    %48 = arith.subf %46, %47 : vector<2x1xf32>
    %49 = math.exp %48 : vector<2x1xf32>
    %50 = arith.subf %45, %47 : vector<2x1xf32>
    %51 = math.exp %50 : vector<2x1xf32>
    %c0_28 = arith.constant 0 : index
    %c0_29 = arith.constant 0 : index
    %52 = vector.load %arg14[%c0_28, %c0_29] : memref<2x1xf32, #tpu.memory_space<vmem>>, vector<2x1xf32>
    %53 = arith.mulf %49, %52 : vector<2x1xf32>
    %54 = arith.addf %53, %51 : vector<2x1xf32>
    %c0_30 = arith.constant 0 : index
    %c0_31 = arith.constant 0 : index
    %55 = vector.load %arg14[%c0_30, %c0_31] : memref<2x1xf32, #tpu.memory_space<vmem>>, vector<2x1xf32>
    tpu.vector_store %arg14[%c0_30, %c0_31], %54 {strides = array<i32>} : memref<2x1xf32, #tpu.memory_space<vmem>>, vector<2x1xf32>,
    %56 = vector.shape_cast %49 : vector<2x1xf32> to vector<2x1x1xf32>
    %c0_32 = arith.constant 0 : index
    %c0_33 = arith.constant 0 : index
    %c0_34 = arith.constant 0 : index
    %57 = vector.load %arg15[%c0_32, %c0_33, %c0_34] : memref<2x4x16xf32, #tpu.memory_space<vmem>>, vector<2x4x16xf32>
    %58 = vector.broadcast %56 : vector<2x1x1xf32> to vector<2x4x16xf32>
    %59 = arith.mulf %58, %57 : vector<2x4x16xf32>
    %60 = vector.shape_cast %51 : vector<2x1xf32> to vector<2x1x1xf32>
    %61 = vector.broadcast %60 : vector<2x1x1xf32> to vector<2x4x16xf32>
    %62 = arith.mulf %61, %34 : vector<2x4x16xf32>
    %63 = arith.addf %59, %62 : vector<2x4x16xf32>
    %c0_35 = arith.constant 0 : index
    %c0_36 = arith.constant 0 : index
    %c0_37 = arith.constant 0 : index
    %64 = vector.load %arg15[%c0_35, %c0_36, %c0_37] : memref<2x4x16xf32, #tpu.memory_space<vmem>>, vector<2x4x16xf32>
    tpu.vector_store %arg15[%c0_35, %c0_36, %c0_37], %63 {strides = array<i32>} : memref<2x4x16xf32, #tpu.memory_space<vmem>>, vector<2x4x16xf32>,
    %c0_38 = arith.constant 0 : index
    %c0_39 = arith.constant 0 : index
    %65 = vector.load %arg13[%c0_38, %c0_39] : memref<2x1xf32, #tpu.memory_space<vmem>>, vector<2x1xf32>
    tpu.vector_store %arg13[%c0_38, %c0_39], %47 {strides = array<i32>} : memref<2x1xf32, #tpu.memory_space<vmem>>, vector<2x1xf32>,
    %c3_i32 = arith.constant 3 : i32
    %66 = arith.cmpi eq, %arg0, %c3_i32 : i32
    %67 = arith.extui %66 : i1 to i32
    %c0_i32_40 = arith.constant 0 : i32
    %68 = arith.cmpi ne, %67, %c0_i32_40 : i32
    scf.if %68 {
      %c0_41 = arith.constant 0 : index
      %c0_42 = arith.constant 0 : index
      %69 = vector.load %arg14[%c0_41, %c0_42] : memref<2x1xf32, #tpu.memory_space<vmem>>, vector<2x1xf32>
      %70 = tpu.reciprocal %69 {approx = true} : vector<2x1xf32> -> vector<2x1xf32>
      %c0_43 = arith.constant 0 : index
      %c0_44 = arith.constant 0 : index
      %c0_45 = arith.constant 0 : index
      %71 = vector.load %arg15[%c0_43, %c0_44, %c0_45] : memref<2x4x16xf32, #tpu.memory_space<vmem>>, vector<2x4x16xf32>
      %72 = vector.shape_cast %70 : vector<2x1xf32> to vector<2x1x1xf32>
      %73 = vector.broadcast %72 : vector<2x1x1xf32> to vector<2x4x16xf32>
      %74 = arith.mulf %71, %73 : vector<2x4x16xf32>
      %cst_46 = arith.constant 0.000000e+00 : f32
      %75 = vector.broadcast %cst_46 : f32 to vector<2x4x16xf32>
      %76 = arith.maximumf %74, %75 : vector<2x4x16xf32>
      %77 = vector.shape_cast %76 : vector<2x4x16xf32> to vector<8x16xf32>
      %c0_47 = arith.constant 0 : index
      %c0_48 = arith.constant 0 : index
      %78 = vector.load %arg9[%c0_47, %c0_48] : memref<16x32xf32, #tpu.memory_space<vmem>>, vector<16x32xf32>
      %cst_49 = arith.constant dense<0.000000e+00> : vector<8x32xf32>
      %79 = tpu.matmul %77, %78, %cst_49 {dimension_numbers = #tpu.dot_dimension_numbers<[1], [0], [0], [1], [0, 0, 1, 1], [], []>} : vector<8x16xf32>, vector<16x32xf32>, vector<8x32xf32> -> vector<8x32xf32>
      %80 = vector.shape_cast %79 : vector<8x32xf32> to vector<2x4x32xf32>
      %c0_50 = arith.constant 0 : index
      %c0_51 = arith.constant 0 : index
      %81 = vector.load %arg10[%c0_50, %c0_51] : memref<1x32xf32, #tpu.memory_space<vmem>>, vector<1x32xf32>
      %82 = vector.shape_cast %81 : vector<1x32xf32> to vector<1x1x32xf32>
      %83 = vector.broadcast %82 : vector<1x1x32xf32> to vector<2x4x32xf32>
      %84 = arith.addf %80, %83 : vector<2x4x32xf32>
      %c0_52 = arith.constant 0 : index
      %c0_53 = arith.constant 0 : index
      %c0_54 = arith.constant 0 : index
      %85 = vector.load %arg4[%c0_52, %c0_53, %c0_54] : memref<2x4x32xf32, #tpu.memory_space<vmem>>, vector<2x4x32xf32>
      %86 = arith.addf %85, %84 : vector<2x4x32xf32>
      %c0_55 = arith.constant 0 : index
      %c0_56 = arith.constant 0 : index
      %c0_57 = arith.constant 0 : index
      %87 = vector.load %arg11[%c0_55, %c0_56, %c0_57] : memref<2x4x32xf32, #tpu.memory_space<vmem>>, vector<2x4x32xf32>
      tpu.vector_store %arg11[%c0_55, %c0_56, %c0_57], %86 {strides = array<i32>} : memref<2x4x32xf32, #tpu.memory_space<vmem>>, vector<2x4x32xf32>,
    } else {
    }
    return
  }
  func.func @transform_0(%arg0: i32) -> (i32, i32, i32, i32) {
    %c0_i32 = arith.constant 0 : i32
    %c0_i32_0 = arith.constant 0 : i32
    %c0_i32_1 = arith.constant 0 : i32
    %c0_i32_2 = arith.constant 0 : i32
    return %arg0, %c0_i32, %c0_i32_0, %c0_i32_1 : i32, i32, i32, i32
  }
  func.func @transform_1(%arg0: i32) -> (i32, i32, i32) {
    %c0_i32 = arith.constant 0 : i32
    %c0_i32_0 = arith.constant 0 : i32
    %c0_i32_1 = arith.constant 0 : i32
    return %arg0, %c0_i32, %c0_i32_0 : i32, i32, i32
  }
  func.func @transform_2(%arg0: i32) -> (i32, i32, i32) {
    %c0_i32 = arith.constant 0 : i32
    %c0_i32_0 = arith.constant 0 : i32
    %c0_i32_1 = arith.constant 0 : i32
    return %arg0, %c0_i32, %c0_i32_0 : i32, i32, i32
  }
  func.func @transform_3(%arg0: i32) -> (i32, i32, i32) {
    %c0_i32 = arith.constant 0 : i32
    %c0_i32_0 = arith.constant 0 : i32
    %c0_i32_1 = arith.constant 0 : i32
    %c0_i32_2 = arith.constant 0 : i32
    return %c0_i32, %c0_i32_0, %c0_i32_1 : i32, i32, i32
  }
  func.func @transform_4(%arg0: i32) -> (i32, i32) {
    %c0_i32 = arith.constant 0 : i32
    %c0_i32_0 = arith.constant 0 : i32
    %c0_i32_1 = arith.constant 0 : i32
    return %c0_i32, %c0_i32_0 : i32, i32
  }
  func.func @transform_5(%arg0: i32) -> (i32, i32) {
    %c0_i32 = arith.constant 0 : i32
    %c0_i32_0 = arith.constant 0 : i32
    %c0_i32_1 = arith.constant 0 : i32
    return %c0_i32, %c0_i32_0 : i32, i32
  }
  func.func @transform_6(%arg0: i32) -> (i32, i32) {
    %c0_i32 = arith.constant 0 : i32
    %c0_i32_0 = arith.constant 0 : i32
    %c0_i32_1 = arith.constant 0 : i32
    return %c0_i32, %c0_i32_0 : i32, i32
  }
  func.func @transform_7(%arg0: i32) -> (i32, i32) {
    %c0_i32 = arith.constant 0 : i32
    %c0_i32_0 = arith.constant 0 : i32
    %c0_i32_1 = arith.constant 0 : i32
    return %c0_i32, %c0_i32_0 : i32, i32
  }
  func.func @transform_8(%arg0: i32) -> (i32, i32) {
    %c0_i32 = arith.constant 0 : i32
    %c0_i32_0 = arith.constant 0 : i32
    %c0_i32_1 = arith.constant 0 : i32
    return %c0_i32, %c0_i32_0 : i32, i32
  }
  func.func @transform_9(%arg0: i32) -> (i32, i32) {
    %c0_i32 = arith.constant 0 : i32
    %c0_i32_0 = arith.constant 0 : i32
    %c0_i32_1 = arith.constant 0 : i32
    return %c0_i32, %c0_i32_0 : i32, i32
  }
  func.func @transform_10(%arg0: i32) -> (i32, i32, i32) {
    %c0_i32 = arith.constant 0 : i32
    %c0_i32_0 = arith.constant 0 : i32
    %c0_i32_1 = arith.constant 0 : i32
    %c0_i32_2 = arith.constant 0 : i32
    return %c0_i32, %c0_i32_0, %c0_i32_1 : i32, i32, i32
  }
}

</mosaic_0001>

<bundles_post_ra>
// kernel: tpu_custom_call.1
= control target key start
LH: loop header
LB: loop body
LE: loop exit
PB: predicated region body
PF: predicated region fallthrough
CT: control target
= control target key end

     0   :  { %s1671_s0 = inlined_call_operand.vmem [shape: f32[4,2,8,32], index: 0, kind: input, shape index: {}]   ;;  %s1672_s1 = inlined_call_operand.vmem [shape: f32[4,32,16], index: 1, kind: input, shape index: {}]   ;;  %s1673_s2 = inlined_call_operand.vmem [shape: f32[4,1,16], index: 2, kind: input, shape index: {}]   ;;  %s1674_s3 = inlined_call_operand.vmem [shape: f32[2,4,32], index: 3, kind: input, shape index: {}]   ;;  %s1675_s4 = inlined_call_operand.vmem [shape: f32[32,16], index: 4, kind: input, shape index: {}]   ;;  %s1676_s5 = inlined_call_operand.vmem [shape: f32[1,16], index: 5, kind: input, shape index: {}]   ;;  %s1677_s6 = inlined_call_operand.vmem [shape: f32[1,16], index: 6, kind: input, shape index: {}]   ;;  %s1678_s7 = inlined_call_operand.<no memory space> [shape: f32[1,1], index: 7, kind: input, shape index: {}]   ;;  %s1679_s8 = inlined_call_operand.vmem [shape: f32[16,32], index: 8, kind: input, shape index: {}]   ;;  %s1680_s9 = inlined_call_operand.vmem [shape: f32[1,32], index: 9, kind: input, shape index: {}]   ;;  %s1681_s10 = inlined_call_operand.hbm [shape: f32[2,4,32], index: 10, kind: output, shape index: {}]  }
   0x1   :  { %v15_v0 = vstv %s1678_s7 }
   0x2   :  { %16 = vst [vmem:[#allocation6] sm:$0x1] %v15_v0 }
   0x3   :  { %17 = vsyncpa [#allocation8], 0  ;;  %s1528_s15 = smov 0  }
   0x4 LB: > { %s1534_s16 = sadd.s32 4294967295, %s1455_s15   ;;  %p1282_p0 = scmp.ge.s32.totalorder %s1455_s15, 1  ;;  %s1455_s15 = sphi %s1528_s15, %s23_s15  }
   0x5   : > { %p328_p1 = scmp.lt.s32.totalorder %s1455_s15, 5 }
   0x7   : > { %p329_p2 = pnand %p1282_p0, %p328_p1 }
   0x8   : > { %p369_p3 = scmp.lt.s32.totalorder (!%p329_p2), %s1534_s16, 3  ;;  %p1287_p4 = scmp.ne.s32.totalorder (!%p329_p2), %s1534_s16, 0 }
   0x9   : > { %332 = sbr.rel (%p329_p2) target bundleno = 1363 (0x553), region = 60 }
   0xe   : > { %s1540_s7 = scalar_select %p369_p3, %s1534_s16, 3 }
   0xf   : > { %385 = sbr.rel (%p1287_p4) target bundleno = 227 (0xe3), region = 64 }
  0x10   : > { %s1308_s17 = sshll.u32 %s1540_s7, 4  ;;  %s1309_s18 = sshll.u32 %s1540_s7, 5 }
  0x11   : > { %s1547_s21 = scalar_lea.vmem %s1671_s0, %s1308_s17  ;;  %s1552_s24 = scalar_lea.vmem %s1672_s1, %s1309_s18 }
  0x12   : > { %s381_s27 = scalar_lea.vmem %s1673_s2, %s1540_s7 }
  0x14   : > { %vm485_vm0 = vcmask 1024   ;;  %v393_v1 = vld [vmem:[%s1675_s4 + $0x18] sm:$0xff]  ;;  %v1457_v2 = vmov 0.0   ;;  %v1458_v3 = vmov -inf   ;;  %v392_v4 = vld [vmem:[%s1675_s4 + $0x10] sm:$0xff]  ;;  %vm1459_vm1 = vmmov 0  }
  0x15   : > { %1332 = vmatprep.subr.mxu0 %v1457_v2  ;;  %486 = vst.msk [vmem:[#allocation3] sm:$0x3] %vm485_vm0, %v1458_v3  ;;  %487 = vst.msk [vmem:[#allocation4] sm:$0x3] %vm485_vm0, %v1457_v2  ;;  %v386_v5 = vld [vmem:[%s1674_s3] sm:$0xf]  ;;  %1340 = vmatprep.mubr.msk.f32.mxu0 %vm1459_vm1, %v1457_v2 }
  0x16   : > { %v387_v6 = vld [vmem:[%s1674_s3 + $0x4] sm:$0xf]  ;;  %1333 = vmatpush3.msra.mxu0 %v393_v1  ;;  %v388_v7 = vmax.f32 %v386_v5, 0.0  ;;  %v391_v9 = vld [vmem:[%s1675_s4 + $0x8] sm:$0xff]  ;;  %vm397_vm2 = vcmask 261120   ;;  %vm482_vm3 = vcmask 125952  }
  0x17   : > { %v389_v8 = vmax.f32 %v387_v6, 0.0  ;;  %1334 = vmatprep.subr.mxu0 %v1457_v2  ;;  %v390_v10 = vld [vmem:[%s1675_s4] sm:$0xff]  ;;  %488 = vst.msk [vmem:[#allocation5] sm:$0xf] %vm482_vm3, %v1457_v2  ;;  %489 = vst.msk [vmem:[#allocation5 + $0x4] sm:$0xf] %vm482_vm3, %v1457_v2 }
  0x18   : > { %1335 = vmatpush3.msra.mxu0 %v392_v4  ;;  %v1289_v12 = vld [vmem:[%s1676_s5] ss:$0 sm:$0xff] }
  0x19   : > { %1336 = vmatprep.subr.mxu0 %v1457_v2  ;;  %v396_v11 = vcombine.low %v388_v7, %v389_v8 }
  0x1a   : > { %1337 = vmatpush3.msra.mxu0 %v391_v9 }
  0x1b   : > { %1338 = vmatprep.subr.mxu0 %v1457_v2 }
  0x1c   : > { %1339 = vmatpush3.msra.mxu0 %v390_v10 }
  0x1d   : > { %1341 = vmatmul.mubr.msk.f32.vlgmr.msra.gmra.mxu0 %vm397_vm2, %v396_v11 }
  0xdd   : > { %v466_v13 = vpop.f32.mrf.mxu0 }
  0xde   : > { %v471_v14 = vcombine.high %v466_v13, %v466_v13  ;;  %v480_v15 = vadd.f32 %v1289_v12, %v466_v13 }
  0xdf   : > { %v1342_v16 = vpop.f32.mrf.mxu0 }
  0xe0   : > { %v481_v17 = vadd.f32 %v1289_v12, %v471_v14  ;;  %483 = vst.msk [vmem:[#allocation2] sm:$0xf] %vm482_vm3, %v480_v15 }
  0xe2   : > { %484 = vst.msk [vmem:[#allocation2 + $0x4] sm:$0xf] %vm482_vm3, %v481_v17 }
  0xe3 PF: > { %v497_v18 = vld [vmem:[%s1552_s24 + $0x18] sm:$0xff]  ;;  %v496_v19 = vld [vmem:[%s1552_s24 + $0x10] sm:$0xff]  ;;  %v490_v20 = vld [vmem:[%s1547_s21] sm:$0xff]  ;;  %vm498_vm4 = vcmask 261120   ;;  %v1460_v26 = vmov 0.0   ;;  %vm1461_vm5 = vmmov 0   ;;  %v776_v6 = vlaneseq }
  0xe4   : > { %1343 = vmatprep.subr.mxu0 %v497_v18  ;;  %v495_v21 = vld [vmem:[%s1552_s24 + $0x8] sm:$0xff]  ;;  %v492_v22 = vmax.f32 %v490_v20, 0.0  ;;  %v494_v24 = vld [vmem:[%s1552_s24] sm:$0xff]  ;;  %1354 = vmatprep.subr.mxu1 %v1460_v26  ;;  %vm589_vm6 = vcmask 130048   ;;  %vm945_vm7 = vcmask 1041409   ;;  %vm948_vm8 = vcmask 123904  }
  0xe5   : > { %1344 = vmatpush3.msra.mxu0 %v497_v18  ;;  %v491_v23 = vld [vmem:[%s1547_s21 + $0x8] sm:$0xff]  ;;  %1356 = vmatprep.mubr.msk.f32.mxu1 %vm1461_vm5, %v1460_v26  ;;  %v1292_v27 = vld [vmem:[%s381_s27] ss:$0 sm:$0xff]  ;;  %v1462_v58 = vmov 0   ;;  %v1300_v59 = vld [vmem:[#allocation6] ss:$0 sm:$0xff] }
  0xe6   : > { %1345 = vmatprep.subr.mxu0 %v496_v19  ;;  %1351 = vmatprep.mubr.msk.f32.mxu0 %vm498_vm4, %v492_v22  ;;  %v493_v25 = vmax.f32 %v491_v23, 0.0  ;;  %v1299_v49 = vld [vmem:[%s1677_s6] ss:$0 sm:$0xff]  ;;  %v960_v60 = vld [vmem:[#allocation3] sm:$0x3]  ;;  %vm971_vm9 = vcmask 1024  }
  0xe7   : > { %1346 = vmatpush3.msra.mxu0 %v496_v19  ;;  %v607_v35 = vld [vmem:[#allocation2] sm:$0xf]  ;;  %1408 = vset.pattern.permute.xlu1 %v1462_v58  ;;  %v1463_v4 = vmov 1966171168   ;;  %v777_v8 = vshrl.u32 %v776_v6, 7  ;;  %vm763_vm10 = vcmask 60416  }
  0xe8   : > { %1347 = vmatprep.subr.mxu0 %v495_v21  ;;  %1409 = vset.pattern.permute.xlu0 %v1462_v58  ;;  %v975_v5 = vunpack.c.l.s4 %v1463_v4  ;;  %v968_v10 = vld [vmem:[#allocation4] sm:$0x3]  ;;  %vm784_vm11 = vcmask 64512   ;;  %vm1059_vm12 = vcmask 125952   ;;  %p1301_p5 = scmp.ne.s32.totalorder %s1534_s16, 3 }
  0xe9   : > { %1348 = vmatpush3.msra.mxu0 %v495_v21  ;;  %v608_v40 = vld [vmem:[#allocation2 + $0x4] sm:$0xf]  ;;  %v1619_v17 = vsub.s32 0, %v777_v8 }
  0xea   : > { %1349 = vmatprep.subr.mxu0 %v494_v24  ;;  %v976_v7 = vunpack.c.0.s8 %v975_v5 }
  0xeb   : > { %1350 = vmatpush3.msra.mxu0 %v494_v24 }
  0xec   : > { %1352 = vmatmul.mubr.msk.f32.vlgmr.msra.gmra.mxu0 %vm498_vm4, %v493_v25  ;;  %1364 = vmatprep.subr.mxu0 %v1460_v26  ;;  %v1615_v9 = vsub.s32 %v976_v7, %v777_v8 }
  0xed   : > { %1366 = vmatprep.mubr.msk.f32.mxu0 %vm1461_vm5, %v1460_v26 }
 0x1ac   : > { %v1353_v28 = vpop.f32.mrf.mxu0 }
 0x1ad   : > { %v1593_v29 = vadd.f32 %v1353_v28, %v1292_v27 }
 0x1ae   : > { %v571_v30 = vpop.f32.mrf.mxu0 }
 0x1af   : > { %v597_v31 = vsel %vm589_vm6, %v1593_v29, 0.0  ;;  %v1597_v32 = vadd.f32 %v1292_v27, %v571_v30 }
 0x1b0   : > { %v598_v33 = vrot.slane %v597_v31, 4 }
 0x1b1   : > { %v590_v34 = vsel %vm589_vm6, %v1597_v32, 0.0  ;;  %1355 = vmatpush3.xpose.msk.msra.mxu1 %vm589_vm6, %v1597_v32  ;;  %1365 = vmatpush3.msra.mxu0 %v1597_v32 }
 0x1b2   : > { %v599_v36 = vadd.f32 %v598_v33, %v597_v31  ;;  %v591_v37 = vrot.slane %v590_v34, 4  ;;  %1359 = vmatprep.subr.mxu1 %v1460_v26 }
 0x1b4   : > { %v600_v38 = vrot.slane %v599_v36, 2  ;;  %v592_v39 = vadd.f32 %v591_v37, %v590_v34  ;;  %1357 = vmatmul.mubr.msk.f32.vlgmr.msra.gmra.mxu1 %vm589_vm6, %v607_v35 }
 0x1b5   : > { %1360 = vmatpush3.xpose.msk.msra.mxu1 %vm589_vm6, %v1593_v29  ;;  %1361 = vmatprep.mubr.msk.f32.mxu1 %vm1461_vm5, %v1460_v26 }
 0x1b6   : > { %v593_v41 = vrot.slane %v592_v39, 2  ;;  %v601_v42 = vadd.f32 %v600_v38, %v599_v36  ;;  %1369 = vmatprep.subr.mxu1 %v1460_v26 }
 0x1b8   : > { %v594_v43 = vadd.f32 %v593_v41, %v592_v39  ;;  %v602_v44 = vrot.slane %v601_v42, 1  ;;  %1362 = vmatmul.mubr.msk.f32.vlgmr.msra.gmra.mxu1 %vm589_vm6, %v608_v40 }
 0x1b9   : > { %1370 = vmatpush3.msra.mxu1 %v1593_v29  ;;  %1371 = vmatprep.mubr.msk.f32.mxu1 %vm1461_vm5, %v1460_v26 }
 0x1ba   : > { %v595_v45 = vrot.slane %v594_v43, 1  ;;  %v603_v46 = vadd.f32 %v602_v44, %v601_v42 }
 0x1bc   : > { %v596_v47 = vadd.f32 %v595_v45, %v594_v43  ;;  %v606_v48 = vmul.f32 0.125, %v603_v46 }
 0x1be   : > { %v605_v50 = vmul.f32 0.125, %v596_v47  ;;  %v932_v51 = vmul.f32 %v608_v40, %v606_v48  ;;  %v779_v47 = vrot.slane %v1597_v32, %v1619_v17  ;;  %v996_v48 = vld [vmem:[#allocation5] sm:$0xf] }
 0x1c0   : > { %v931_v52 = vmul.f32 %v607_v35, %v605_v50  ;;  %v941_v53 = vmul.f32 %v1299_v49, %v932_v51 }
 0x1c2   : > { %v940_v54 = vmul.f32 %v1299_v49, %v931_v52  ;;  %v944_v55 = vrot.slane %v941_v53, 7 }
 0x1c4   : > { %v946_v56 = vsel %vm945_vm7, %v944_v55, %v940_v54  ;;  %v783_v55 = vrot.slane %v1593_v29, %v1619_v17 }
 0x1c5   : > { %v949_v57 = vsel %vm948_vm8, %v946_v56, 0.0  ;;  %v997_v56 = vld [vmem:[#allocation5 + $0x4] sm:$0xf] }
 0x1c6   : > { %950 = vadd.xlane.f32.xlu1 %v949_v57 }
 0x24f   : > { %v951_v61 = vpop.xlane.xlu1 %950 }
 0x250   : > { %v959_v62 = vadd.f32 %v1300_v59, %v951_v61 }
 0x252   : > { %v961_v63 = vmax.f32 %v960_v60, %v959_v62 }
 0x254   : > { %v962_v0 = vsub.f32 %v960_v60, %v961_v63  ;;  %v965_v1 = vsub.f32 %v959_v62, %v961_v63  ;;  %1062 = vst.msk [vmem:[#allocation3] sm:$0x3] %vm971_vm9, %v961_v63 }
 0x256   : > { %v963_v2 = vmul.f32 1.442695, %v962_v0  ;;  %v966_v3 = vmul.f32 1.442695, %v965_v1 }
 0x258   : > { %1410 = vpow2.f32 %v963_v2 }
 0x259   : > { %1412 = vpow2.f32 %v966_v3 }
 0x265   : > { %v1411_v11 = vpop.eup %1410 }
 0x266   : > { %v1413_v12 = vpop.eup %1412  ;;  %v969_v13 = vmul.f32 %v1411_v11, %v968_v10  ;;  %v980_v14 = vrot.slane %v1411_v11, %v1615_v9 }
 0x267   : > { %v1023_v15 = vrot.slane %v1413_v12, %v1615_v9 }
 0x268   : > { %v970_v16 = vadd.f32 %v1413_v12, %v969_v13  ;;  %v988_v18 = vrot.slane %v980_v14, %v1615_v9  ;;  %v981_v35 = vcombine.high %v980_v14, %v980_v14 }
 0x269   : > { %v1031_v20 = vrot.slane %v1023_v15, %v1615_v9  ;;  %v1024_v21 = vcombine.high %v1023_v15, %v1023_v15 }
 0x26a   : > { %972 = vst.msk [vmem:[#allocation4] sm:$0x3] %vm971_vm9, %v970_v16  ;;  %v1001_v19 = vrot.slane %v988_v18, %v1619_v17  ;;  %v995_v36 = vrot.slane %v981_v35, %v1615_v9 }
 0x26b   : > { %v1042_v22 = vrot.slane %v1031_v20, %v1619_v17  ;;  %v1038_v23 = vrot.slane %v1024_v21, %v1615_v9 }
 0x26c   : > { %1007 = vperm.xlu1 %1408, %v1001_v19   ;;  %v1005_v37 = vrot.slane %v995_v36, %v1619_v17 }
 0x26d   : > { %v1046_v24 = vrot.slane %v1038_v23, %v1619_v17 }
 0x270   : > { %1048 = vperm.xlu1 %1408, %v1042_v22  }
 0x274   : > { %v681_v25 = vpop.f32.mrf.mxu1  ;;  %1052 = vperm.xlu1 %1408, %v1046_v24  }
 0x275   : > { %v761_v26 = vmax.f32 %v681_v25, 0.0 }
 0x276   : > { %v1358_v27 = vpop.f32.mrf.mxu1 }
 0x277   : > { %v764_v28 = vsel %vm763_vm10, %v761_v26, 0.0 }
 0x278   : > { %765 = vadd.xlane.f32.xlu0 %v764_v28  ;;  %v757_v30 = vpop.f32.mrf.mxu1 }
 0x279   : > { %v762_v31 = vmax.f32 %v757_v30, 0.0 }
 0x27a   : > { %v1363_v33 = vpop.f32.mrf.mxu1 }
 0x27b   : > { %v767_v34 = vsel %vm763_vm10, %v762_v31, 0.0 }
 0x27c   : > { %768 = vadd.xlane.f32.xlu0 %v767_v34 }
 0x292   : > { %1011 = vperm.xlu0 %1409, %v1005_v37  }
 0x2e7   : > { %v1008_v46 = vpop.permute.xlu1 %1007 }
 0x2e8   : > { %v1014_v53 = vmul.f32 %v1008_v46, %v996_v48 }
 0x2eb   : > { %v1049_v49 = vpop.permute.xlu1 %1048 }
 0x2ef   : > { %v1053_v61 = vpop.permute.xlu1 %1052 }
 0x301   : > { %v766_v38 = vpop.xlane.xlu0 %765 }
 0x302   : > { %v770_v39 = vmax.f32 %v766_v38, 1e-06 }
 0x304   : > { %1414 = vrcp.f32 %v770_v39 }
 0x305   : > { %v769_v40 = vpop.xlane.xlu0 %768 }
 0x306   : > { %v771_v41 = vmax.f32 %v769_v40, 1e-06 }
 0x308   : > { %1416 = vrcp.f32 %v771_v41 }
 0x30d   : > { %v1012_v57 = vpop.permute.xlu0 %1011 }
 0x30e   : > { %v1015_v63 = vmul.f32 %v1012_v57, %v997_v56 }
 0x311   : > { %v1415_v42 = vpop.eup %1414 }
 0x312   : > { %v774_v43 = vmul.f32 %v1415_v42, %v761_v26 }
 0x314   : > { %1367 = vmatmul.mubr.msk.f32.vlgmr.msra.gmra.mxu0 %vm784_vm11, %v774_v43 }
 0x315   : > { %v1417_v44 = vpop.eup %1416 }
 0x316   : > { %v775_v45 = vmul.f32 %v1417_v44, %v762_v31 }
 0x318   : > { %1372 = vmatmul.mubr.msk.f32.vlgmr.msra.gmra.mxu1 %vm784_vm11, %v775_v45 }
 0x3d4   : > { %v854_v50 = vpop.f32.mrf.mxu0 }
 0x3d5   : > { %v855_v51 = vadd.f32 %v854_v50, %v779_v47 }
 0x3d6   : > { %v1368_v52 = vpop.f32.mrf.mxu0 }
 0x3d7   : > { %v1055_v54 = vmul.f32 %v1049_v49, %v855_v51 }
 0x3d8   : > { %v927_v58 = vpop.f32.mrf.mxu1 }
 0x3d9   : > { %v1057_v59 = vadd.f32 %v1055_v54, %v1014_v53  ;;  %v928_v60 = vadd.f32 %v927_v58, %v783_v55 }
 0x3da   : > { %v1373_v62 = vpop.f32.mrf.mxu1 }
 0x3db   : > { %1060 = vst.msk [vmem:[#allocation5] sm:$0xf] %vm1059_vm12, %v1057_v59  ;;  %v1056_v32 = vmul.f32 %v1053_v61, %v928_v60  ;;  %1066 = sbr.rel (%p1301_p5) target bundleno = 1347 (0x543), region = 68 }
 0x3dd   : > { %v1058_v0 = vadd.f32 %v1056_v32, %v1015_v63 }
 0x3df   : > { %1061 = vst.msk [vmem:[#allocation5 + $0x4] sm:$0xf] %vm1059_vm12, %v1058_v0 }
 0x3e0   : > { %v1067_v1 = vld [vmem:[#allocation4] sm:$0x3]  ;;  %v1464_v2 = vmov 0   ;;  %v1465_v10 = vmov 0.0   ;;  %v1114_v12 = vld [vmem:[%s1679_s8] sm:$0xff]  ;;  %vm1466_vm13 = vmmov 0  }
 0x3e1   : > { %1418 = vset.pattern.permute.xlu0 %v1464_v2  ;;  %1419 = vrcp.f32 %v1067_v1  ;;  %1374 = vmatprep.subr.mxu0 %v1465_v10  ;;  %v1115_v11 = vld [vmem:[%s1679_s8 + $0x8] sm:$0xff]  ;;  %v1303_v21 = vld [vmem:[%s1680_s9] ss:$0 sm:$0xff]  ;;  %v1204_v26 = vld [vmem:[%s1674_s3 + $0x4] sm:$0xf]  ;;  %vm1207_vm14 = vcmask 257024  }
 0x3e2   : > { %1375 = vmatpush3.msra.mxu0 %v1115_v11  ;;  %1378 = vmatprep.mubr.msk.f32.mxu0 %vm1466_vm13, %v1465_v10  ;;  %v1203_v23 = vld [vmem:[%s1674_s3] sm:$0xf] }
 0x3e3   : > { %1376 = vmatprep.subr.mxu0 %v1465_v10 }
 0x3e4   : > { %1377 = vmatpush3.msra.mxu0 %v1114_v12 }
 0x3e6   : > { %v1070_v14 = vld [vmem:[#allocation5 + $0x4] sm:$0xf] }
 0x3ee   : > { %v1420_v29 = vpop.eup %1419 }
 0x3ef   : > { %v1078_v3 = vrot.slane %v1420_v29, %v1615_v9 }
 0x3f1   : > { %v1086_v4 = vrot.slane %v1078_v3, %v1615_v9  ;;  %v1079_v5 = vcombine.high %v1078_v3, %v1078_v3 }
 0x3f3   : > { %v1097_v6 = vrot.slane %v1086_v4, %v1619_v17  ;;  %v1093_v7 = vrot.slane %v1079_v5, %v1615_v9  ;;  %v1069_v9 = vld [vmem:[#allocation5] sm:$0xf] }
 0x3f5   : > { %1103 = vperm.xlu0 %1418, %v1097_v6   ;;  %v1101_v8 = vrot.slane %v1093_v7, %v1619_v17 }
 0x3f9   : > { %1107 = vperm.xlu0 %1418, %v1101_v8  }
 0x470   : > { %v1104_v13 = vpop.permute.xlu0 %1103 }
 0x471   : > { %v1110_v15 = vmul.f32 %v1104_v13, %v1069_v9 }
 0x473   : > { %v1112_v18 = vmax.f32 %v1110_v15, 0.0 }
 0x474   : > { %v1108_v16 = vpop.permute.xlu0 %1107 }
 0x475   : > { %v1111_v17 = vmul.f32 %v1108_v16, %v1070_v14 }
 0x477   : > { %v1113_v19 = vmax.f32 %v1111_v17, 0.0 }
 0x479   : > { %v1118_v20 = vcombine.low %v1112_v18, %v1113_v19 }
 0x47b   : > { %1379 = vmatmul.mubr.msk.f32.vlgmr.msra.gmra.mxu0 %vm589_vm6, %v1118_v20 }
 0x53b   : > { %v1187_v22 = vpop.f32.mrf.mxu0 }
 0x53c   : > { %v1192_v24 = vcombine.high %v1187_v22, %v1187_v22  ;;  %v1201_v25 = vadd.f32 %v1303_v21, %v1187_v22 }
 0x53d   : > { %v1380_v27 = vpop.f32.mrf.mxu0 }
 0x53e   : > { %v1202_v28 = vadd.f32 %v1303_v21, %v1192_v24  ;;  %v1205_v30 = vadd.f32 %v1203_v23, %v1201_v25 }
 0x540   : > { %v1206_v31 = vadd.f32 %v1204_v26, %v1202_v28  ;;  %1208 = vst.msk [vmem:[#allocation7] sm:$0xf] %vm1207_vm14, %v1205_v30 }
 0x542   : > { %1209 = vst.msk [vmem:[#allocation7 + $0x4] sm:$0xf] %vm1207_vm14, %v1206_v31 }
 0x543 PF: > { %p1385_p6 = scmp.eq.s32.totalorder %s1534_s16, 3  ;;  %s1467_s19 = smov [#allocation7]  }
 0x544   : > { %s1216_s20 = sshll.u32 %s1467_s19, 4  ;;  %s1217_s20 = int_to_ptr.vmem [resolvable:$true] %s1216_s20 }
 0x545   : > { %s1421_s22 = scalar_lea.vmem %s1217_s20, 128  ;;  %p1428_p10 = scmp.lt.s32.totalorder %s1217_s20, %s1217_s20 }
 0x546   : > { %p1422_p7 = scmp.ne.s32.totalorder %s1217_s20, %s1421_s22  ;;  %p1429_p11 = scmp.lt.s32.totalorder %s1421_s22, %s1421_s22 }
 0x548   : > { %p1423_p8 = pnand %p1422_p7, %p1385_p6  ;;  %p1430_p12 = por %p1429_p11, %p1428_p10 }
 0x54a   : > { %p1424_p9 = pneg %p1423_p8 }
 0x54c   : > { %p1431_p13 = pnand %p1430_p12, %p1424_p9 }
 0x54e   : > { %1434 = shalt.err (!%p1431_p13)
}
 0x54f   : > { %s1468_s23 = smov 64   ;;  %s1469_s25 = smov 4  }
 0x550   : > { %1382 = dma.vmem_to_hbm [thread:$0]  (%p1385_p6), %s1217_s20, 128, %s1681_s10, [#allocation8], %s1468_s23, %s1468_s23, %s1469_s25  }
 0x551   : > { %1450 = dma.done.wait (%p1385_p6), [#allocation8], 128  }
 0x552   : > { %1452 = vsyncadd (%p1385_p6), [#allocation8], 4294967168 }
 0x553 PF: > { %s23_s15 = sadd.s32 1, %s1455_s15  }
 0x554   : > { %p20_p0 = scmp.ge.s32.totalorder %s23_s15, 6  }
 0x556   :  { %22 = sbr.rel (!%p20_p0) target bundleno = 4 (0x4), region = 101 }
 0x55b   :  { %1232 = vsyncpa [#allocation8], 1 }
 0x55c   :  { %1234 = vsyncpa [#allocation8 + $0x1], 1 }

</bundles_post_ra>
